<compile_context>
chip_gen: v7x
topology: tpu7x:2x2x1
jax: 0.10.0
libtpu: 0.0.40
codegen_flags: <defaults>
</compile_context>

<pallas_src>
import functools

import jax
import jax.numpy as jnp
from jax.experimental import pallas as pl
from jax.experimental.pallas import tpu as pltpu

ROWS, COLS = 4, 4
INPUT_SIZE = ROWS * COLS      # 16
HIDDEN = 128
OUTPUT_SIZE = 4
PADDED_OUT = 128              # lane-dense output head (real Q-values are [:, :4])


def _round_up(n, m):
    return ((n + m - 1) // m) * m


def dqn_kernel(x_ref,
               w1_ref, b1_ref,
               w2_ref, b2_ref,
               w3_ref, b3_ref,
               w4_ref, b4_ref,
               o_ref):
    # x: [TB, 16] f32 (cast to bf16 here); weights: bf16 [in, out];
    # biases: f32 [1, out]; o: [TB, 128] f32 (lane-dense padded head).
    x = x_ref[...].astype(jnp.bfloat16)

    h = jnp.dot(x, w1_ref[...], preferred_element_type=jnp.float32) + b1_ref[...]
    h = jnp.maximum(h, 0.0).astype(jnp.bfloat16)

    h = jnp.dot(h, w2_ref[...], preferred_element_type=jnp.float32) + b2_ref[...]
    h = jnp.maximum(h, 0.0).astype(jnp.bfloat16)

    h = jnp.dot(h, w3_ref[...], preferred_element_type=jnp.float32) + b3_ref[...]
    h = jnp.maximum(h, 0.0).astype(jnp.bfloat16)

    o_ref[...] = (jnp.dot(h, w4_ref[...], preferred_element_type=jnp.float32)
                  + b4_ref[...]).astype(o_ref.dtype)


def _resident_spec(shape):
    # Whole-array block with a constant index_map: DMA'd once, stays
    # VMEM-resident across all batch-tile grid steps.  Shape is passed as an
    # argument (no late-binding closure bug).
    return pl.BlockSpec(shape, lambda i: (0, 0))


def prepare_params(params):
    """Cast weights to bf16, keep biases f32, pad the 4-wide head to 128 lanes."""
    w4 = jnp.zeros((HIDDEN, PADDED_OUT), jnp.float32).at[:, :OUTPUT_SIZE].set(params["w4"])
    b4 = jnp.zeros((1, PADDED_OUT), jnp.float32).at[:, :OUTPUT_SIZE].set(params["b4"])
    return (
        params["w1"].astype(jnp.bfloat16), params["b1"].astype(jnp.float32),
        params["w2"].astype(jnp.bfloat16), params["b2"].astype(jnp.float32),
        params["w3"].astype(jnp.bfloat16), params["b3"].astype(jnp.float32),
        w4.astype(jnp.bfloat16), b4.astype(jnp.float32),
    )


@functools.partial(jax.jit, static_argnames=("batch_tile",))
def dqn_forward(x, params, *, batch_tile=512):
    """x: [B, INPUT_SIZE] f32; params: dict (w1,b1,...,w4,b4). Returns [B, 4] f32."""
    B = x.shape[0]
    # Tile rows: multiple of 16 (clean bf16 sublane packing), capped at batch_tile.
    tile = min(batch_tile, _round_up(B, 16))
    Bp = _round_up(B, tile)
    if Bp != B:
        x = jnp.pad(x, ((0, Bp - B), (0, 0)))
    x = x.astype(jnp.float32)

    w1, b1, w2, b2, w3, b3, w4, b4 = prepare_params(params)

    grid = (Bp // tile,)
    in_specs = [
        pl.BlockSpec((tile, INPUT_SIZE), lambda i: (i, 0)),   # x: tiled over batch
        _resident_spec(w1.shape), _resident_spec(b1.shape),
        _resident_spec(w2.shape), _resident_spec(b2.shape),
        _resident_spec(w3.shape), _resident_spec(b3.shape),
        _resident_spec(w4.shape), _resident_spec(b4.shape),
    ]
    out = pl.pallas_call(
        dqn_kernel,
        out_shape=jax.ShapeDtypeStruct((Bp, PADDED_OUT), jnp.float32),
        grid=grid,
        in_specs=in_specs,
        out_specs=pl.BlockSpec((tile, PADDED_OUT), lambda i: (i, 0)),
        compiler_params=pltpu.CompilerParams(
            dimension_semantics=("parallel",)),   # shards batch tiles across TCs on v7x
    )(x, w1, b1, w2, b2, w3, b3, w4, b4)

    return out[:B, :OUTPUT_SIZE]


def init_params(key):
    """Deterministic PyTorch-style init: U(-1/sqrt(fan_in), 1/sqrt(fan_in))."""
    dims = [(INPUT_SIZE, HIDDEN), (HIDDEN, HIDDEN), (HIDDEN, HIDDEN), (HIDDEN, OUTPUT_SIZE)]
    params = {}
    for i, (fan_in, fan_out) in enumerate(dims, start=1):
        key, kw, kb = jax.random.split(key, 3)
        bound = 1.0 / (fan_in ** 0.5)
        params[f"w{i}"] = jax.random.uniform(
            kw, (fan_in, fan_out), jnp.float32, -bound, bound)
        params[f"b{i}"] = jax.random.uniform(
            kb, (1, fan_out), jnp.float32, -bound, bound)
    return params


def dqn_reference(x, params):
    """Pure-JAX reference replicating the kernel's bf16-operand / f32-accum math."""
    def q(a):  # mimic bf16 operand quantization
        return a.astype(jnp.bfloat16).astype(jnp.float32)

    h = q(x)
    h = jnp.maximum(h @ q(params["w1"]) + params["b1"], 0.0)
    h = q(h)
    h = jnp.maximum(h @ q(params["w2"]) + params["b2"], 0.0)
    h = q(h)
    h = jnp.maximum(h @ q(params["w3"]) + params["b3"], 0.0)
    h = q(h)
    return h @ q(params["w4"]) + params["b4"]


if __name__ == "__main__":
    key = jax.random.PRNGKey(0)
    key, kx = jax.random.split(key)

    # Small, deterministic example: 37 boards (non-multiple batch exercises
    # padding and a 3-step batch grid with tile=16).
    B = 37
    x = jax.random.uniform(kx, (B, INPUT_SIZE), jnp.float32, 0.0, 11.0)
    params = init_params(key)

    out = dqn_forward(x, params, batch_tile=16)
    out = jax.block_until_ready(out)

    ref = dqn_reference(x, params)
    assert out.shape == (B, OUTPUT_SIZE)
    assert jnp.allclose(out, ref, atol=1e-3, rtol=1e-3), "mismatch vs reference"

    print("KERNEL_OK")
</pallas_src>

<mosaic_0001>
module attributes {stable_mosaic.version = 11 : i64} {
  func.func @dqn_kernel(%arg0: i32, %arg1: memref<16x16xf32, #tpu.memory_space<vmem>>, %arg2: memref<16x128xbf16, #tpu.memory_space<vmem>>, %arg3: memref<1x128xf32, #tpu.memory_space<vmem>>, %arg4: memref<128x128xbf16, #tpu.memory_space<vmem>>, %arg5: memref<1x128xf32, #tpu.memory_space<vmem>>, %arg6: memref<128x128xbf16, #tpu.memory_space<vmem>>, %arg7: memref<1x128xf32, #tpu.memory_space<vmem>>, %arg8: memref<128x128xbf16, #tpu.memory_space<vmem>>, %arg9: memref<1x128xf32, #tpu.memory_space<vmem>>, %arg10: memref<16x128xf32, #tpu.memory_space<vmem>>) attributes {dimension_semantics = [#tpu.dimension_semantics<parallel>], iteration_bounds = array<i64: 3>, scalar_prefetch = 0 : i64, scratch_operands = 0 : i64, tpu.core_type = #tpu.core_type<tc>, window_params = [{transform_indices = @transform_0, window_bounds = array<i64: 16, 16>}, {pipeline_mode = #tpu.pipeline_mode<synchronous>, transform_indices = @transform_1, window_bounds = array<i64: 16, 128>}, {pipeline_mode = #tpu.pipeline_mode<synchronous>, transform_indices = @transform_2, window_bounds = array<i64: 1, 128>}, {pipeline_mode = #tpu.pipeline_mode<synchronous>, transform_indices = @transform_3, window_bounds = array<i64: 128, 128>}, {pipeline_mode = #tpu.pipeline_mode<synchronous>, transform_indices = @transform_4, window_bounds = array<i64: 1, 128>}, {pipeline_mode = #tpu.pipeline_mode<synchronous>, transform_indices = @transform_5, window_bounds = array<i64: 128, 128>}, {pipeline_mode = #tpu.pipeline_mode<synchronous>, transform_indices = @transform_6, window_bounds = array<i64: 1, 128>}, {pipeline_mode = #tpu.pipeline_mode<synchronous>, transform_indices = @transform_7, window_bounds = array<i64: 128, 128>}, {pipeline_mode = #tpu.pipeline_mode<synchronous>, transform_indices = @transform_8, window_bounds = array<i64: 1, 128>}, {transform_indices = @transform_9, window_bounds = array<i64: 16, 128>}]} {
    %c0 = arith.constant 0 : index
    %c0_0 = arith.constant 0 : index
    %0 = vector.load %arg1[%c0, %c0_0] : memref<16x16xf32, #tpu.memory_space<vmem>>, vector<16x16xf32>
    %1 = arith.truncf %0 : vector<16x16xf32> to vector<16x16xbf16>
    %c0_1 = arith.constant 0 : index
    %c0_2 = arith.constant 0 : index
    %2 = vector.load %arg2[%c0_1, %c0_2] : memref<16x128xbf16, #tpu.memory_space<vmem>>, vector<16x128xbf16>
    %cst = arith.constant dense<0.000000e+00> : vector<16x128xf32>
    %3 = tpu.matmul %1, %2, %cst {dimension_numbers = #tpu.dot_dimension_numbers<[1], [0], [0], [1], [0, 0, 1, 1], [], []>} : vector<16x16xbf16>, vector<16x128xbf16>, vector<16x128xf32> -> vector<16x128xf32>
    %c0_3 = arith.constant 0 : index
    %c0_4 = arith.constant 0 : index
    %4 = vector.load %arg3[%c0_3, %c0_4] : memref<1x128xf32, #tpu.memory_space<vmem>>, vector<1x128xf32>
    %5 = vector.broadcast %4 : vector<1x128xf32> to vector<16x128xf32>
    %6 = arith.addf %3, %5 : vector<16x128xf32>
    %cst_5 = arith.constant 0.000000e+00 : f32
    %7 = vector.broadcast %cst_5 : f32 to vector<16x128xf32>
    %8 = arith.maximumf %6, %7 : vector<16x128xf32>
    %9 = arith.truncf %8 : vector<16x128xf32> to vector<16x128xbf16>
    %c0_6 = arith.constant 0 : index
    %c0_7 = arith.constant 0 : index
    %10 = vector.load %arg4[%c0_6, %c0_7] : memref<128x128xbf16, #tpu.memory_space<vmem>>, vector<128x128xbf16>
    %cst_8 = arith.constant dense<0.000000e+00> : vector<16x128xf32>
    %11 = tpu.matmul %9, %10, %cst_8 {dimension_numbers = #tpu.dot_dimension_numbers<[1], [0], [0], [1], [0, 0, 1, 1], [], []>} : vector<16x128xbf16>, vector<128x128xbf16>, vector<16x128xf32> -> vector<16x128xf32>
    %c0_9 = arith.constant 0 : index
    %c0_10 = arith.constant 0 : index
    %12 = vector.load %arg5[%c0_9, %c0_10] : memref<1x128xf32, #tpu.memory_space<vmem>>, vector<1x128xf32>
    %13 = vector.broadcast %12 : vector<1x128xf32> to vector<16x128xf32>
    %14 = arith.addf %11, %13 : vector<16x128xf32>
    %cst_11 = arith.constant 0.000000e+00 : f32
    %15 = vector.broadcast %cst_11 : f32 to vector<16x128xf32>
    %16 = arith.maximumf %14, %15 : vector<16x128xf32>
    %17 = arith.truncf %16 : vector<16x128xf32> to vector<16x128xbf16>
    %c0_12 = arith.constant 0 : index
    %c0_13 = arith.constant 0 : index
    %18 = vector.load %arg6[%c0_12, %c0_13] : memref<128x128xbf16, #tpu.memory_space<vmem>>, vector<128x128xbf16>
    %cst_14 = arith.constant dense<0.000000e+00> : vector<16x128xf32>
    %19 = tpu.matmul %17, %18, %cst_14 {dimension_numbers = #tpu.dot_dimension_numbers<[1], [0], [0], [1], [0, 0, 1, 1], [], []>} : vector<16x128xbf16>, vector<128x128xbf16>, vector<16x128xf32> -> vector<16x128xf32>
    %c0_15 = arith.constant 0 : index
    %c0_16 = arith.constant 0 : index
    %20 = vector.load %arg7[%c0_15, %c0_16] : memref<1x128xf32, #tpu.memory_space<vmem>>, vector<1x128xf32>
    %21 = vector.broadcast %20 : vector<1x128xf32> to vector<16x128xf32>
    %22 = arith.addf %19, %21 : vector<16x128xf32>
    %cst_17 = arith.constant 0.000000e+00 : f32
    %23 = vector.broadcast %cst_17 : f32 to vector<16x128xf32>
    %24 = arith.maximumf %22, %23 : vector<16x128xf32>
    %25 = arith.truncf %24 : vector<16x128xf32> to vector<16x128xbf16>
    %c0_18 = arith.constant 0 : index
    %c0_19 = arith.constant 0 : index
    %26 = vector.load %arg8[%c0_18, %c0_19] : memref<128x128xbf16, #tpu.memory_space<vmem>>, vector<128x128xbf16>
    %cst_20 = arith.constant dense<0.000000e+00> : vector<16x128xf32>
    %27 = tpu.matmul %25, %26, %cst_20 {dimension_numbers = #tpu.dot_dimension_numbers<[1], [0], [0], [1], [0, 0, 1, 1], [], []>} : vector<16x128xbf16>, vector<128x128xbf16>, vector<16x128xf32> -> vector<16x128xf32>
    %c0_21 = arith.constant 0 : index
    %c0_22 = arith.constant 0 : index
    %28 = vector.load %arg9[%c0_21, %c0_22] : memref<1x128xf32, #tpu.memory_space<vmem>>, vector<1x128xf32>
    %29 = vector.broadcast %28 : vector<1x128xf32> to vector<16x128xf32>
    %30 = arith.addf %27, %29 : vector<16x128xf32>
    %c0_23 = arith.constant 0 : index
    %c0_24 = arith.constant 0 : index
    %31 = vector.load %arg10[%c0_23, %c0_24] : memref<16x128xf32, #tpu.memory_space<vmem>>, vector<16x128xf32>
    tpu.vector_store %arg10[%c0_23, %c0_24], %30 {strides = array<i32>} : memref<16x128xf32, #tpu.memory_space<vmem>>, vector<16x128xf32>,
    return
  }
  func.func @transform_0(%arg0: i32) -> (i32, i32) {
    %c0_i32 = arith.constant 0 : i32
    %c0_i32_0 = arith.constant 0 : i32
    return %arg0, %c0_i32 : i32, i32
  }
  func.func @transform_1(%arg0: i32) -> (i32, i32) {
    %c0_i32 = arith.constant 0 : i32
    %c0_i32_0 = arith.constant 0 : i32
    %c0_i32_1 = arith.constant 0 : i32
    return %c0_i32, %c0_i32_0 : i32, i32
  }
  func.func @transform_2(%arg0: i32) -> (i32, i32) {
    %c0_i32 = arith.constant 0 : i32
    %c0_i32_0 = arith.constant 0 : i32
    %c0_i32_1 = arith.constant 0 : i32
    return %c0_i32, %c0_i32_0 : i32, i32
  }
  func.func @transform_3(%arg0: i32) -> (i32, i32) {
    %c0_i32 = arith.constant 0 : i32
    %c0_i32_0 = arith.constant 0 : i32
    %c0_i32_1 = arith.constant 0 : i32
    return %c0_i32, %c0_i32_0 : i32, i32
  }
  func.func @transform_4(%arg0: i32) -> (i32, i32) {
    %c0_i32 = arith.constant 0 : i32
    %c0_i32_0 = arith.constant 0 : i32
    %c0_i32_1 = arith.constant 0 : i32
    return %c0_i32, %c0_i32_0 : i32, i32
  }
  func.func @transform_5(%arg0: i32) -> (i32, i32) {
    %c0_i32 = arith.constant 0 : i32
    %c0_i32_0 = arith.constant 0 : i32
    %c0_i32_1 = arith.constant 0 : i32
    return %c0_i32, %c0_i32_0 : i32, i32
  }
  func.func @transform_6(%arg0: i32) -> (i32, i32) {
    %c0_i32 = arith.constant 0 : i32
    %c0_i32_0 = arith.constant 0 : i32
    %c0_i32_1 = arith.constant 0 : i32
    return %c0_i32, %c0_i32_0 : i32, i32
  }
  func.func @transform_7(%arg0: i32) -> (i32, i32) {
    %c0_i32 = arith.constant 0 : i32
    %c0_i32_0 = arith.constant 0 : i32
    %c0_i32_1 = arith.constant 0 : i32
    return %c0_i32, %c0_i32_0 : i32, i32
  }
  func.func @transform_8(%arg0: i32) -> (i32, i32) {
    %c0_i32 = arith.constant 0 : i32
    %c0_i32_0 = arith.constant 0 : i32
    %c0_i32_1 = arith.constant 0 : i32
    return %c0_i32, %c0_i32_0 : i32, i32
  }
  func.func @transform_9(%arg0: i32) -> (i32, i32) {
    %c0_i32 = arith.constant 0 : i32
    %c0_i32_0 = arith.constant 0 : i32
    return %arg0, %c0_i32 : i32, i32
  }
}

</mosaic_0001>

<bundles_post_ra>
// kernel: dqn_forward.1
= control target key start
LH: loop header
LB: loop body
LE: loop exit
PB: predicated region body
PF: predicated region fallthrough
CT: control target
= control target key end

     0   :  { %s1034_s30 = smov 0   ;;  %s1178_s0 = inlined_call_operand.vmem [shape: f32[48,16], index: 0, kind: input, shape index: {}]   ;;  %s1179_s1 = inlined_call_operand.vmem [shape: bf16[16,128], index: 1, kind: input, shape index: {}]   ;;  %s1180_s2 = inlined_call_operand.vmem [shape: f32[1,128], index: 2, kind: input, shape index: {}]   ;;  %s1181_s3 = inlined_call_operand.vmem [shape: bf16[128,128], index: 3, kind: input, shape index: {}]   ;;  %s1182_s4 = inlined_call_operand.vmem [shape: f32[1,128], index: 4, kind: input, shape index: {}]   ;;  %s1183_s5 = inlined_call_operand.vmem [shape: bf16[128,128], index: 5, kind: input, shape index: {}]   ;;  %s1184_s6 = inlined_call_operand.vmem [shape: f32[1,128], index: 6, kind: input, shape index: {}]   ;;  %s1185_s7 = inlined_call_operand.vmem [shape: bf16[128,128], index: 7, kind: input, shape index: {}]   ;;  %s1186_s8 = inlined_call_operand.vmem [shape: f32[1,128], index: 8, kind: input, shape index: {}]   ;;  %s1187_s9 = inlined_call_operand.vmem [shape: f32[48,128], index: 9, kind: output, shape index: {}]  }
   0x1 LB: > { %s803_s10 = sadd.s32 4294967295, %s980_s30   ;;  %p807_p0 = scmp.ge.s32.totalorder %s980_s30, 1  ;;  %s980_s30 = sphi %s1034_s30, %s19_s30  }
   0x2   : > { %p288_p1 = scmp.lt.s32.totalorder %s980_s30, 4 }
   0x4   : > { %p289_p2 = pnand %p807_p0, %p288_p1 }
   0x5   : > { %v949_v0 = vld [vmem:[%s1179_s1] sm:$0xff] (!%p289_p2)   ;;  %v982_v1 = vmov (!%p289_p2), 0.0   ;;  %s808_s13 = sshll.u32 (!%p289_p2), %s803_s10, 1  ;;  %vm983_vm0 = vmmov (!%p289_p2), 0   ;;  %v951_v3 = vld [vmem:[%s1181_s3 + $0x8] sm:$0xff] (!%p289_p2)   ;;  %v952_v4 = vld [vmem:[%s1181_s3 + $0x10] sm:$0xff] (!%p289_p2)  }
   0x6   : > { %292 = sbr.rel (%p289_p2) target bundleno = 896 (0x380), region = 56  ;;  %873 = vmatprep.subr.bf16.mxu0 (!%p289_p2), %v982_v1  ;;  %879 = vmatprep.subr.bf16.mxu1 (!%p289_p2), %v982_v1  ;;  %v950_v2 = vld [vmem:[%s1181_s3] sm:$0xff] (!%p289_p2)   ;;  %p325_p3 = scmp.lt.s32.totalorder (!%p289_p2), %s808_s13, 5  ;;  %vm355_vm1 = vcmask (!%p289_p2), 130048   ;;  %v953_v8 = vld [vmem:[%s1181_s3 + $0x18] sm:$0xff] (!%p289_p2)   ;;  %v955_v10 = vld [vmem:[%s1181_s3 + $0x28] sm:$0xff] (!%p289_p2)  }
   0x7   : > { %874 = vmatpush3.bf16.msra.mxu0 (!%p289_p2), %v949_v0  ;;  %875 = vmatprep.mubr.msk.bf16.mxu0 (!%p289_p2), %vm983_vm0, %v982_v1  ;;  %v954_v9 = vld [vmem:[%s1181_s3 + $0x20] sm:$0xff] (!%p289_p2)   ;;  %v956_v11 = vld [vmem:[%s1181_s3 + $0x30] sm:$0xff] (!%p289_p2)   ;;  %v957_v12 = vld [vmem:[%s1181_s3 + $0x38] sm:$0xff] (!%p289_p2)  }
   0x8   : > { %880 = vmatpush3.bf16.msra.mxu1 (!%p289_p2), %v950_v2  ;;  %895 = vmatprep.mubr.msk.bf16.mxu1 (!%p289_p2), %vm983_vm0, %v982_v1  ;;  %v958_v13 = vld [vmem:[%s1183_s5] sm:$0xff] (!%p289_p2)   ;;  %v959_v14 = vld [vmem:[%s1183_s5 + $0x8] sm:$0xff] (!%p289_p2)   ;;  %v960_v15 = vld [vmem:[%s1183_s5 + $0x10] sm:$0xff] (!%p289_p2)  }
   0x9   : > { %881 = vmatprep.subr.bf16.mxu1 (!%p289_p2), %v982_v1  ;;  %899 = vmatprep.subr.bf16.mxu0 (!%p289_p2), %v982_v1  ;;  %v961_v16 = vld [vmem:[%s1183_s5 + $0x18] sm:$0xff] (!%p289_p2)   ;;  %v962_v17 = vld [vmem:[%s1183_s5 + $0x20] sm:$0xff] (!%p289_p2)   ;;  %v963_v18 = vld [vmem:[%s1183_s5 + $0x28] sm:$0xff] (!%p289_p2)  }
   0xa   : > { %v812_v19 = vld [vmem:[%s1180_s2] ss:$0 sm:$0xff] (!%p289_p2)  ;;  %v964_v29 = vld [vmem:[%s1183_s5 + $0x30] sm:$0xff] (!%p289_p2)   ;;  %v965_v30 = vld [vmem:[%s1183_s5 + $0x38] sm:$0xff] (!%p289_p2)  }
   0xb   : > { %v966_v31 = vld [vmem:[%s1185_s7] sm:$0xff] (!%p289_p2)   ;;  %v967_v32 = vld [vmem:[%s1185_s7 + $0x8] sm:$0xff] (!%p289_p2)   ;;  %v968_v33 = vld [vmem:[%s1185_s7 + $0x10] sm:$0xff] (!%p289_p2)  }
   0xc   : > { %882 = vmatpush3.bf16.msra.mxu1 (!%p289_p2), %v951_v3  ;;  %v969_v34 = vld [vmem:[%s1185_s7 + $0x18] sm:$0xff] (!%p289_p2)   ;;  %v970_v35 = vld [vmem:[%s1185_s7 + $0x20] sm:$0xff] (!%p289_p2)   ;;  %v971_v36 = vld [vmem:[%s1185_s7 + $0x28] sm:$0xff] (!%p289_p2)  }
   0xd   : > { %s1189_s13 = smov (!%p325_p3, %s808_s13), 5  ;;  %883 = vmatprep.subr.bf16.mxu1 %v982_v1  ;;  %v815_v37 = vld [vmem:[%s1182_s4] ss:$0 sm:$0xff]  ;;  %v972_v47 = vld [vmem:[%s1185_s7 + $0x30] sm:$0xff]   ;;  %v973_v48 = vld [vmem:[%s1185_s7 + $0x38] sm:$0xff]  }
   0xe   : > { %s809_s18 = sshll.u32 %s1189_s13, 3  ;;  %v824_v49 = vld [vmem:[%s1184_s6] ss:$0 sm:$0xff] }
   0xf   : > { %s328_s21 = scalar_lea.vmem %s1178_s0, %s809_s18  ;;  %v833_v59 = vld [vmem:[%s1186_s8] ss:$0 sm:$0xff]  ;;  %s334_s22 = scalar_lea.vmem %s1187_s9, %s809_s18 }
  0x10   : > { %v337_v5 = vld [vmem:[%s328_s21] sm:$0xff]  ;;  %v338_v6 = vld [vmem:[%s328_s21 + $0x8] sm:$0xff]  ;;  %884 = vmatpush3.bf16.msra.mxu1 %v952_v4 }
  0x11   : > { %v339_v7 = vpack.c.bf16 %v338_v6, %v337_v5  ;;  %885 = vmatprep.subr.bf16.mxu1 %v982_v1 }
  0x13   : > { %876 = vmatmul.mubr.msk.bf16.vlgmr.msra.gmra.mrb[0].mxu0 %vm355_vm1, %v339_v7 }
  0x14   : > { %915 = vmatprep.mubr.msk.bf16.mxu0 %vm983_vm0, %v982_v1  ;;  %886 = vmatpush3.bf16.msra.mxu1 %v953_v8 }
  0x15   : > { %887 = vmatprep.subr.bf16.mxu1 %v982_v1  ;;  %900 = vmatpush3.bf16.msra.mxu0 %v958_v13 }
  0x16   : > { %901 = vmatprep.subr.bf16.mxu0 %v982_v1 }
  0x18   : > { %888 = vmatpush3.bf16.msra.mxu1 %v954_v9 }
  0x19   : > { %889 = vmatprep.subr.bf16.mxu1 %v982_v1  ;;  %902 = vmatpush3.bf16.msra.mxu0 %v959_v14 }
  0x1a   : > { %903 = vmatprep.subr.bf16.mxu0 %v982_v1 }
  0x1c   : > { %890 = vmatpush3.bf16.msra.mxu1 %v955_v10 }
  0x1d   : > { %891 = vmatprep.subr.bf16.mxu1 %v982_v1  ;;  %904 = vmatpush3.bf16.msra.mxu0 %v960_v15 }
  0x1e   : > { %905 = vmatprep.subr.bf16.mxu0 %v982_v1 }
  0x20   : > { %892 = vmatpush3.bf16.msra.mxu1 %v956_v11 }
  0x21   : > { %893 = vmatprep.subr.bf16.mxu1 %v982_v1  ;;  %906 = vmatpush3.bf16.msra.mxu0 %v961_v16 }
  0x22   : > { %907 = vmatprep.subr.bf16.mxu0 %v982_v1 }
  0x24   : > { %894 = vmatpush3.bf16.msra.mxu1 %v957_v12 }
  0x25   : > { %919 = vmatprep.subr.bf16.mxu1 %v982_v1  ;;  %908 = vmatpush3.bf16.msra.mxu0 %v962_v17 }
  0x26   : > { %909 = vmatprep.subr.bf16.mxu0 %v982_v1 }
  0x29   : > { %910 = vmatpush3.bf16.msra.mxu0 %v963_v18 }
  0x2a   : > { %911 = vmatprep.subr.bf16.mxu0 %v982_v1 }
  0x2d   : > { %912 = vmatpush3.bf16.msra.mxu0 %v964_v29 }
  0x2e   : > { %913 = vmatprep.subr.bf16.mxu0 %v982_v1 }
  0x31   : > { %914 = vmatpush3.bf16.msra.mxu0 %v965_v30 }
  0xe6   : > { %v393_v20 = vpop.f32.mrb[0].mxu0 }
  0xe7   : > { %v394_v21 = vadd.f32 %v812_v19, %v393_v20  ;;  %v877_v22 = vpop.f32.mrb[1].mxu0 }
  0xe8   : > { %v396_v23 = vpop.f32.mrb[2].mxu0 }
  0xe9   : > { %v397_v24 = vadd.f32 %v812_v19, %v396_v23  ;;  %v878_v25 = vpop.f32.mrb[3].mxu0  ;;  %v400_v26 = vmax.f32 %v394_v21, 0.0 }
  0xeb   : > { %v401_v27 = vmax.f32 %v397_v24, 0.0 }
  0xed   : > { %v402_v28 = vpack.c.bf16 %v401_v27, %v400_v26 }
  0xef   : > { %896 = vmatmul.mubr.bf16.vlgmr.msra.gmra.mrb[0].mxu1 %v402_v28 }
  0xf0   : > { %935 = vmatprep.mubr.msk.bf16.mxu1 %vm983_vm0, %v982_v1  ;;  %920 = vmatpush3.bf16.msra.mxu1 %v966_v31 }
  0xf1   : > { %921 = vmatprep.subr.bf16.mxu1 %v982_v1 }
  0xf4   : > { %922 = vmatpush3.bf16.msra.mxu1 %v967_v32 }
  0xf5   : > { %923 = vmatprep.subr.bf16.mxu1 %v982_v1 }
  0xf8   : > { %924 = vmatpush3.bf16.msra.mxu1 %v968_v33 }
  0xf9   : > { %925 = vmatprep.subr.bf16.mxu1 %v982_v1 }
  0xfc   : > { %926 = vmatpush3.bf16.msra.mxu1 %v969_v34 }
  0xfd   : > { %927 = vmatprep.subr.bf16.mxu1 %v982_v1 }
 0x100   : > { %928 = vmatpush3.bf16.msra.mxu1 %v970_v35 }
 0x101   : > { %929 = vmatprep.subr.bf16.mxu1 %v982_v1 }
 0x104   : > { %930 = vmatpush3.bf16.msra.mxu1 %v971_v36 }
 0x105   : > { %931 = vmatprep.subr.bf16.mxu1 %v982_v1 }
 0x108   : > { %932 = vmatpush3.bf16.msra.mxu1 %v972_v47 }
 0x109   : > { %933 = vmatprep.subr.bf16.mxu1 %v982_v1 }
 0x10c   : > { %934 = vmatpush3.bf16.msra.mxu1 %v973_v48 }
 0x1c2   : > { %v508_v38 = vpop.f32.mrb[0].mxu1 }
 0x1c3   : > { %v509_v39 = vadd.f32 %v815_v37, %v508_v38  ;;  %v897_v40 = vpop.f32.mrb[1].mxu1 }
 0x1c4   : > { %v511_v41 = vpop.f32.mrb[2].mxu1 }
 0x1c5   : > { %v512_v42 = vadd.f32 %v815_v37, %v511_v41  ;;  %v898_v43 = vpop.f32.mrb[3].mxu1  ;;  %v515_v44 = vmax.f32 %v509_v39, 0.0 }
 0x1c7   : > { %v516_v45 = vmax.f32 %v512_v42, 0.0 }
 0x1c9   : > { %v517_v46 = vpack.c.bf16 %v516_v45, %v515_v44 }
 0x1cb   : > { %916 = vmatmul.mubr.bf16.vlgmr.msra.gmra.mrb[4].mxu0 %v517_v46 }
 0x29e   : > { %v623_v50 = vpop.f32.mrb[4].mxu0 }
 0x29f   : > { %v624_v51 = vadd.f32 %v824_v49, %v623_v50  ;;  %v917_v52 = vpop.f32.mrb[5].mxu0 }
 0x2a0   : > { %v626_v53 = vpop.f32.mrb[6].mxu0 }
 0x2a1   : > { %v627_v54 = vadd.f32 %v824_v49, %v626_v53  ;;  %v918_v55 = vpop.f32.mrb[7].mxu0  ;;  %v630_v56 = vmax.f32 %v624_v51, 0.0 }
 0x2a3   : > { %v631_v57 = vmax.f32 %v627_v54, 0.0 }
 0x2a5   : > { %v632_v58 = vpack.c.bf16 %v631_v57, %v630_v56 }
 0x2a7   : > { %936 = vmatmul.mubr.bf16.vlgmr.msra.gmra.mrb[4].mxu1 %v632_v58 }
 0x37a   : > { %v738_v60 = vpop.f32.mrb[4].mxu1 }
 0x37b   : > { %v739_v61 = vadd.f32 %v833_v59, %v738_v60  ;;  %v937_v62 = vpop.f32.mrb[5].mxu1 }
 0x37c   : > { %v741_v63 = vpop.f32.mrb[6].mxu1 }
 0x37d   : > { %745 = vst [vmem:[%s334_s22] sm:$0xff] %v739_v61  ;;  %v742_v0 = vadd.f32 %v833_v59, %v741_v63  ;;  %v938_v1 = vpop.f32.mrb[7].mxu1 }
 0x37f   : > { %746 = vst [vmem:[%s334_s22 + $0x8] sm:$0xff] %v742_v0 }
 0x380 PF: > { %s19_s30 = sadd.s32 1, %s980_s30  }
 0x381   : > { %p16_p4 = scmp.ge.s32.totalorder %s19_s30, 5  }
 0x383   :  { %18 = sbr.rel (!%p16_p4) target bundleno = 1 (0x1), region = 86 }

</bundles_post_ra>
